<compile_context>
chip_gen: v7x
topology: tpu7x:2x2x1
jax: 0.10.0
libtpu: 0.0.40
codegen_flags: <defaults>
</compile_context>

<pallas_src>
import functools

import numpy as np
import jax
import jax.numpy as jnp
from jax.experimental import pallas as pl
from jax.experimental.pallas import tpu as pltpu

SELU_ALPHA = 1.6732632423543772
SELU_SCALE = 1.0507009873554805
BN_EPS = 1e-5
NORM_EPS = 1e-12
BN_INV = np.float32(1.0 / np.sqrt(1.0 + BN_EPS))

UU_GNN_LAYER = 2      # args.uu_gnn_layer
UI_HIDDEN_SPACE = 2   # args.ui_hidden_space (hop count; collapses in-kernel)


# ----------------------------- Pallas kernel ------------------------------ #

def _selu(x):
    return SELU_SCALE * jnp.where(x > 0, x, SELU_ALPHA * (jnp.exp(x) - 1.0))


def social_agg_kernel(e_ref, s_ref, w_ref, out_ref, *, offs, embed_dim, num_layers):
    """One (batch-tile, layer) grid step.

    e_ref  : (1, BT, MAXN, D) bf16 padded neighbor embeddings (zero pad rows)
    s_ref  : (BT, D)  f32 self embeddings u2e[nodes]
    w_ref  : (K, D)   f32 packed weights (8-row-aligned segments)
    out_ref: (BT, D)  f32 cross-layer running average (resident across l)
    """
    D = embed_dim
    l = pl.program_id(1)

    # Upcast the bf16 neighbor stream to f32 immediately (v5e has no bf16 VPU).
    e = e_ref[0].astype(jnp.float32)          # (BT, MAXN, D)
    s = s_ref[...]                            # (BT, D)

    # Static, 8-row-aligned slices taken directly off the packed-weight ref.
    bn  = w_ref[offs["bn_params"]:offs["bn_params"] + 4, :]     # g0, b0, g1, b1
    wip = w_ref[offs["mlp_wip"]:offs["mlp_wip"] + D, :]
    bip = w_ref[offs["mlp_bip"]:offs["mlp_bip"] + 1, :]
    wop = w_ref[offs["mlp_wop"]:offs["mlp_wop"] + D, :]
    bop = w_ref[offs["mlp_bop"]:offs["mlp_bop"] + 1, :]
    wg  = w_ref[offs["gate_w"]:offs["gate_w"] + 3 * D, :]
    bg  = w_ref[offs["gate_b"]:offs["gate_b"] + 1, :]

    # F.normalize(e_u, dim=-1) via rsqrt (EUP); zero pad rows stay zero.
    # entmax_bisect over a size-1 last dim is identically 1.0, so every hop
    # produces the same masked row-sum; the hop average is a no-op.
    sumsq = jnp.sum(e * e, axis=-1, keepdims=True)
    e_n = e * jax.lax.rsqrt(jnp.maximum(sumsq, NORM_EPS * NORM_EPS))
    att_hist = jnp.sum(e_n, axis=1)                              # (BT, D)

    # ---- GAT_MLP (eval-mode BN: mean=0, var=1; dropout = identity) ----
    y = att_hist * BN_INV * bn[0:1] + bn[1:2]
    y = _selu(jnp.dot(y, wip, preferred_element_type=jnp.float32) + bip)
    y = y * BN_INV * bn[2:3] + bn[3:4]
    neigh = jnp.dot(y, wop, preferred_element_type=jnp.float32) + bop

    # ---- gate: single fused (BT, 3D) @ (3D, D) matmul ----
    cat = jnp.concatenate([s, neigh, s * neigh], axis=-1)
    g = jax.nn.sigmoid(jnp.dot(cat, wg, preferred_element_type=jnp.float32) + bg)
    contrib = (g * s + (1.0 - g) * neigh) * np.float32(1.0 / num_layers)

    # In-kernel cross-layer average (output block resident across the l axis).
    @pl.when(l == 0)
    def _():
        out_ref[...] = contrib

    @pl.when(l > 0)
    def _():
        out_ref[...] += contrib


def pack_weights(params):
    """Stack all live (rows, D) weight/bias arrays into one lane-dense slab
    with 8-row-aligned segment starts."""
    names = ["bn_params", "mlp_wip", "mlp_bip", "mlp_wop", "mlp_bop",
             "gate_w", "gate_b"]
    segs, offs, off = [], {}, 0
    for n in names:
        a = jnp.asarray(params[n], jnp.float32)
        offs[n] = off
        pad = (-a.shape[0]) % 8
        if pad:
            a = jnp.concatenate([a, jnp.zeros((pad, a.shape[1]), jnp.float32)], 0)
        segs.append(a)
        off += a.shape[0]
    return jnp.concatenate(segs, axis=0), offs


def _choose_b_tile(B, maxn, D, itemsize):
    """Batch tile: >=512 sublane rows per neighbor-slab DMA, bounded so the
    double-buffered slab fits comfortably in v7x's scoped VMEM, 8-aligned."""
    bt = -(-512 // maxn)                                          # overhead amortization
    bt = min(bt, max(1, (8 << 20) // (2 * maxn * D * itemsize)))  # VMEM bound
    bt = max(8, -(-bt // 8) * 8)                                  # sublane alignment
    bt = min(bt, -(-B // 8) * 8)                                  # don't over-pad tiny B
    return bt


def social_aggregator_pallas(e_stacked, self_feats, w_packed, offs):
    """All GNN layers + cross-layer average in a single pallas_call."""
    L, B, maxn, D = e_stacked.shape
    K = w_packed.shape[0]
    itemsize = jnp.dtype(e_stacked.dtype).itemsize

    bt = _choose_b_tile(B, maxn, D, itemsize)
    B_pad = -(-B // bt) * bt
    if B_pad != B:
        e_stacked = jnp.pad(e_stacked, ((0, 0), (0, B_pad - B), (0, 0), (0, 0)))
        self_feats = jnp.pad(self_feats, ((0, B_pad - B), (0, 0)))
    num_bt = B_pad // bt

    neigh_buf_bytes = bt * maxn * D * itemsize
    vmem_limit = int(min(100 << 20, max(16 << 20, 4 * neigh_buf_bytes + (4 << 20))))

    cost = pl.CostEstimate(
        flops=int(L * B_pad * (4 * maxn * D + 4 * D * D + 6 * D * D + 16 * D)),
        transcendentals=int(L * B_pad * (2 * D + maxn)),
        bytes_accessed=int(e_stacked.size * itemsize + self_feats.size * 4
                           + w_packed.size * 4 + B_pad * D * 4),
    )

    kernel = functools.partial(social_agg_kernel, offs=offs, embed_dim=D,
                               num_layers=L)
    out = pl.pallas_call(
        kernel,
        grid=(num_bt, L),                      # B tiles parallel, layers reduced last
        in_specs=[
            pl.BlockSpec((1, bt, maxn, D), lambda b, l: (l, b, 0, 0)),  # neighbor slab
            pl.BlockSpec((bt, D), lambda b, l: (b, 0)),                 # self embeds
            pl.BlockSpec((K, D), lambda b, l: (0, 0)),                  # packed weights
        ],
        out_specs=pl.BlockSpec((bt, D), lambda b, l: (b, 0)),
        out_shape=jax.ShapeDtypeStruct((B_pad, D), jnp.float32),
        compiler_params=pltpu.CompilerParams(
            dimension_semantics=("parallel", "arbitrary"),
            vmem_limit_bytes=vmem_limit),
        cost_estimate=cost,
    )(e_stacked, self_feats, w_packed)
    return out[:B]


# --------------------------- host-side graph glue -------------------------- #

def build_to_neighs(nodes, social_neighbor, layer):
    """Verbatim reproduction of the neighborhood expansion (incl. the `count` bug)."""
    to_neighs = []
    count = layer
    for node in nodes:
        final_neigh = list(social_neighbor[int(node)])
        while count > 0:
            other_neigh = []
            for other_node in final_neigh:
                other_neigh.extend(social_neighbor[int(other_node)])
            final_neigh = final_neigh + other_neigh
            final_neigh = np.unique(np.array(final_neigh, dtype=object)).tolist()
            count = count - 1
        to_neighs.append(final_neigh)
    return to_neighs


def pad_neighs(to_neighs, max_n):
    B = len(to_neighs)
    idx = np.zeros((B, max_n), dtype=np.int32)
    mask = np.zeros((B, max_n, 1), dtype=np.float32)
    for i, adj in enumerate(to_neighs):
        n = len(adj)
        idx[i, :n] = np.array(adj, dtype=np.int32)
        mask[i, :n, 0] = 1.0
    return idx, mask


# ------------------------- numpy reference (checker) ----------------------- #

def _np_selu(x):
    return SELU_SCALE * np.where(x > 0, x, SELU_ALPHA * (np.exp(x) - 1.0))


def _np_norm(x):
    n = np.sqrt(np.sum(x * x, axis=-1, keepdims=True))
    return x / np.maximum(n, NORM_EPS)


def reference_forward(nodes, u2e, social_neighbor, p):
    D = u2e.shape[1]
    B = len(nodes)
    outs = []
    for layer in range(UU_GNN_LAYER):
        to_neighs = build_to_neighs(nodes, social_neighbor, layer)
        embed = np.zeros((B, D), np.float32)
        for i in range(B):
            adj = to_neighs[i]
            e_u = u2e[np.array(adj, dtype=np.int64)]
            u_rep = u2e[nodes[i]]
            feats = []
            for _h in range(UI_HIDDEN_SPACE):      # explicit hop loop (transliteration)
                e_u = _np_norm(e_u)
                u_rep = _np_norm(u_rep)
                att = np.ones((len(adj), 1), np.float32)   # entmax over size-1 dim
                u_rep = (e_u.T @ att).T
                feats.append(u_rep)
            embed[i] = (sum(feats) / len(feats))[0]
        y = embed * BN_INV * p["bn_params"][0] + p["bn_params"][1]
        y = _np_selu(y @ p["mlp_wip"] + p["mlp_bip"])
        y = y * BN_INV * p["bn_params"][2] + p["bn_params"][3]
        neigh = y @ p["mlp_wop"] + p["mlp_bop"]
        s = u2e[np.array(nodes, dtype=np.int64)]
        comb = np.concatenate([s, neigh, s * neigh], axis=-1)
        g = 1.0 / (1.0 + np.exp(-(comb @ p["gate_w"] + p["gate_b"])))
        outs.append(g * s + (1.0 - g) * neigh)
    return sum(outs) / len(outs)


# ---------------------------------- main ----------------------------------- #

if __name__ == "__main__":
    D = 32
    NUM_USERS = 20
    nodes = [0, 3, 7, 12]
    B = len(nodes)
    L = UU_GNN_LAYER

    # deterministic synthetic social graph
    rng = np.random.default_rng(0)
    social_neighbor = {
        u: sorted(rng.choice(NUM_USERS, size=int(rng.integers(2, 5)),
                             replace=False).tolist())
        for u in range(NUM_USERS)
    }

    # deterministic parameters (weights stored as (in_dim, out_dim) for x @ W).
    # Attention-MLP weights (att1/att2/att3/linear1) are not instantiated:
    # entmax_bisect over a size-1 last dim is identically 1.0, so they cannot
    # affect the forward output.
    ks = jax.random.split(jax.random.PRNGKey(0), 8)

    def nrm(k, shape, scale):
        return (scale * jax.random.normal(k, shape, dtype=jnp.float32)).astype(jnp.float32)

    u2e = nrm(ks[0], (NUM_USERS, D), 0.5)
    params = {
        "bn_params": jnp.concatenate(
            [jnp.ones((1, D)), jnp.zeros((1, D)),
             jnp.ones((1, D)), jnp.zeros((1, D))], axis=0).astype(jnp.float32),
        "mlp_wip": nrm(ks[1], (D, D), 1.0 / np.sqrt(D)),
        "mlp_bip": nrm(ks[2], (1, D), 0.05),
        "mlp_wop": nrm(ks[3], (D, D), 1.0 / np.sqrt(D)),
        "mlp_bop": nrm(ks[4], (1, D), 0.05),
        "gate_w": nrm(ks[5], (3 * D, D), 1.0 / np.sqrt(3 * D)),
        "gate_b": nrm(ks[6], (1, D), 0.05),
    }

    # host-side neighborhood build (irregular graph walk; not a kernel op)
    per_layer_neighs = [build_to_neighs(nodes, social_neighbor, l) for l in range(L)]
    max_len = max(len(a) for tn in per_layer_neighs for a in tn)
    max_n = max(8, int(np.ceil(max_len / 8.0)) * 8)

    idx_all = np.zeros((L, B, max_n), dtype=np.int32)
    msk_all = np.zeros((L, B, max_n, 1), dtype=np.float32)
    for l in range(L):
        idx, mask = pad_neighs(per_layer_neighs[l], max_n)
        idx_all[l] = idx
        msk_all[l] = mask

    # gather + zero padding rows on the host; stream neighbors as bf16
    e_stacked = (u2e[jnp.asarray(idx_all)] * jnp.asarray(msk_all)).astype(jnp.bfloat16)
    self_feats = u2e[jnp.asarray(np.array(nodes, dtype=np.int32))]   # (B, D) f32
    w_packed, offs = pack_weights(params)                            # (K, D) f32

    result = social_aggregator_pallas(e_stacked, self_feats, w_packed, offs)
    result = jax.block_until_ready(result)

    # correctness check against a plain-numpy transliteration of the module
    # (tolerance loosened slightly for the bf16 neighbor-embedding stream)
    params_np = {k: np.asarray(v) for k, v in params.items()}
    ref = reference_forward(nodes, np.asarray(u2e), social_neighbor, params_np)
    err = float(np.max(np.abs(np.asarray(result) - ref)))
    assert np.allclose(np.asarray(result), ref, rtol=3e-2, atol=3e-2), err
    print("KERNEL_OK")
</pallas_src>

<mosaic_0001>
module attributes {stable_mosaic.version = 11 : i64} {
  func.func @social_agg_kernel(%arg0: i32, %arg1: i32, %arg2: memref<1x8x16x32xbf16, #tpu.memory_space<vmem>>, %arg3: memref<8x32xf32, #tpu.memory_space<vmem>>, %arg4: memref<192x32xf32, #tpu.memory_space<vmem>>, %arg5: memref<8x32xf32, #tpu.memory_space<vmem>>) attributes {dimension_semantics = [#tpu.dimension_semantics<parallel>, #tpu.dimension_semantics<arbitrary>], iteration_bounds = array<i64: 1, 2>, scalar_prefetch = 0 : i64, scratch_operands = 0 : i64, tpu.core_type = #tpu.core_type<tc>, window_params = [{transform_indices = @transform_0, window_bounds = array<i64: 1, 8, 16, 32>}, {transform_indices = @transform_1, window_bounds = array<i64: 8, 32>}, {pipeline_mode = #tpu.pipeline_mode<synchronous>, transform_indices = @transform_2, window_bounds = array<i64: 192, 32>}, {transform_indices = @transform_3, window_bounds = array<i64: 8, 32>}]} {
    %c0 = arith.constant 0 : index
    %c0_0 = arith.constant 0 : index
    %c0_1 = arith.constant 0 : index
    %c0_2 = arith.constant 0 : index
    %0 = vector.load %arg2[%c0, %c0_0, %c0_1, %c0_2] : memref<1x8x16x32xbf16, #tpu.memory_space<vmem>>, vector<1x8x16x32xbf16>
    %1 = vector.shape_cast %0 : vector<1x8x16x32xbf16> to vector<8x16x32xbf16>
    %2 = arith.extf %1 : vector<8x16x32xbf16> to vector<8x16x32xf32>
    %c0_3 = arith.constant 0 : index
    %c0_4 = arith.constant 0 : index
    %3 = vector.load %arg3[%c0_3, %c0_4] : memref<8x32xf32, #tpu.memory_space<vmem>>, vector<8x32xf32>
    %c0_5 = arith.constant 0 : index
    %c0_6 = arith.constant 0 : index
    %4 = vector.load %arg4[%c0_5, %c0_6] : memref<192x32xf32, #tpu.memory_space<vmem>>, vector<4x32xf32>
    %c8 = arith.constant 8 : index
    %c0_7 = arith.constant 0 : index
    %5 = vector.load %arg4[%c8, %c0_7] : memref<192x32xf32, #tpu.memory_space<vmem>>, vector<32x32xf32>
    %c40 = arith.constant 40 : index
    %c0_8 = arith.constant 0 : index
    %6 = vector.load %arg4[%c40, %c0_8] : memref<192x32xf32, #tpu.memory_space<vmem>>, vector<1x32xf32>
    %c48 = arith.constant 48 : index
    %c0_9 = arith.constant 0 : index
    %7 = vector.load %arg4[%c48, %c0_9] : memref<192x32xf32, #tpu.memory_space<vmem>>, vector<32x32xf32>
    %c80 = arith.constant 80 : index
    %c0_10 = arith.constant 0 : index
    %8 = vector.load %arg4[%c80, %c0_10] : memref<192x32xf32, #tpu.memory_space<vmem>>, vector<1x32xf32>
    %c88 = arith.constant 88 : index
    %c0_11 = arith.constant 0 : index
    %9 = vector.load %arg4[%c88, %c0_11] : memref<192x32xf32, #tpu.memory_space<vmem>>, vector<96x32xf32>
    %c184 = arith.constant 184 : index
    %c0_12 = arith.constant 0 : index
    %10 = vector.load %arg4[%c184, %c0_12] : memref<192x32xf32, #tpu.memory_space<vmem>>, vector<1x32xf32>
    %11 = arith.mulf %2, %2 : vector<8x16x32xf32>
    %cst = arith.constant dense<0.000000e+00> : vector<8x16xf32>
    %12 = vector.multi_reduction <add>, %11, %cst [2] : vector<8x16x32xf32> to vector<8x16xf32>
    %13 = vector.shape_cast %12 : vector<8x16xf32> to vector<8x16x1xf32>
    %cst_13 = arith.constant 1.000000e-24 : f32
    %14 = vector.broadcast %cst_13 : f32 to vector<8x16x1xf32>
    %15 = arith.maximumf %13, %14 : vector<8x16x1xf32>
    %16 = math.rsqrt %15 : vector<8x16x1xf32>
    %17 = vector.broadcast %16 : vector<8x16x1xf32> to vector<8x16x32xf32>
    %18 = arith.mulf %2, %17 : vector<8x16x32xf32>
    %cst_14 = arith.constant dense<0.000000e+00> : vector<8x32xf32>
    %19 = vector.multi_reduction <add>, %18, %cst_14 [1] : vector<8x16x32xf32> to vector<8x32xf32>
    %cst_15 = arith.constant 0.999994993 : f32
    %20 = vector.broadcast %cst_15 : f32 to vector<8x32xf32>
    %21 = arith.mulf %19, %20 : vector<8x32xf32>
    %22 = vector.extract_strided_slice %4 {offsets = [0, 0], sizes = [1, 32], strides = [1, 1]} : vector<4x32xf32> to vector<1x32xf32>
    %23 = vector.broadcast %22 : vector<1x32xf32> to vector<8x32xf32>
    %24 = arith.mulf %21, %23 : vector<8x32xf32>
    %25 = vector.extract_strided_slice %4 {offsets = [1, 0], sizes = [1, 32], strides = [1, 1]} : vector<4x32xf32> to vector<1x32xf32>
    %26 = vector.broadcast %25 : vector<1x32xf32> to vector<8x32xf32>
    %27 = arith.addf %24, %26 : vector<8x32xf32>
    %cst_16 = arith.constant dense<0.000000e+00> : vector<8x32xf32>
    %28 = tpu.matmul %27, %5, %cst_16 {dimension_numbers = #tpu.dot_dimension_numbers<[1], [0], [0], [1], [0, 0, 1, 1], [], []>} : vector<8x32xf32>, vector<32x32xf32>, vector<8x32xf32> -> vector<8x32xf32>
    %29 = vector.broadcast %6 : vector<1x32xf32> to vector<8x32xf32>
    %30 = arith.addf %28, %29 : vector<8x32xf32>
    %cst_17 = arith.constant 0.000000e+00 : f32
    %31 = vector.broadcast %cst_17 : f32 to vector<8x32xf32>
    %32 = arith.cmpf ogt, %30, %31 : vector<8x32xf32>
    %33 = math.exp %30 : vector<8x32xf32>
    %cst_18 = arith.constant 1.000000e+00 : f32
    %34 = vector.broadcast %cst_18 : f32 to vector<8x32xf32>
    %35 = arith.subf %33, %34 : vector<8x32xf32>
    %cst_19 = arith.constant 1.67326319 : f32
    %36 = vector.broadcast %cst_19 : f32 to vector<8x32xf32>
    %37 = arith.mulf %36, %35 : vector<8x32xf32>
    %38 = arith.select %32, %30, %37 : vector<8x32xi1>, vector<8x32xf32>
    %cst_20 = arith.constant 1.05070102 : f32
    %39 = vector.broadcast %cst_20 : f32 to vector<8x32xf32>
    %40 = arith.mulf %39, %38 : vector<8x32xf32>
    %cst_21 = arith.constant 0.999994993 : f32
    %41 = vector.broadcast %cst_21 : f32 to vector<8x32xf32>
    %42 = arith.mulf %40, %41 : vector<8x32xf32>
    %43 = vector.extract_strided_slice %4 {offsets = [2, 0], sizes = [1, 32], strides = [1, 1]} : vector<4x32xf32> to vector<1x32xf32>
    %44 = vector.broadcast %43 : vector<1x32xf32> to vector<8x32xf32>
    %45 = arith.mulf %42, %44 : vector<8x32xf32>
    %46 = vector.extract_strided_slice %4 {offsets = [3, 0], sizes = [1, 32], strides = [1, 1]} : vector<4x32xf32> to vector<1x32xf32>
    %47 = vector.broadcast %46 : vector<1x32xf32> to vector<8x32xf32>
    %48 = arith.addf %45, %47 : vector<8x32xf32>
    %cst_22 = arith.constant dense<0.000000e+00> : vector<8x32xf32>
    %49 = tpu.matmul %48, %7, %cst_22 {dimension_numbers = #tpu.dot_dimension_numbers<[1], [0], [0], [1], [0, 0, 1, 1], [], []>} : vector<8x32xf32>, vector<32x32xf32>, vector<8x32xf32> -> vector<8x32xf32>
    %50 = vector.broadcast %8 : vector<1x32xf32> to vector<8x32xf32>
    %51 = arith.addf %49, %50 : vector<8x32xf32>
    %52 = arith.mulf %3, %51 : vector<8x32xf32>
    %53 = tpu.concatenate %3, %51, %52 in 1 : vector<8x32xf32>, vector<8x32xf32>, vector<8x32xf32> -> vector<8x96xf32>
    %cst_23 = arith.constant dense<0.000000e+00> : vector<8x32xf32>
    %54 = tpu.matmul %53, %9, %cst_23 {dimension_numbers = #tpu.dot_dimension_numbers<[1], [0], [0], [1], [0, 0, 1, 1], [], []>} : vector<8x96xf32>, vector<96x32xf32>, vector<8x32xf32> -> vector<8x32xf32>
    %55 = vector.broadcast %10 : vector<1x32xf32> to vector<8x32xf32>
    %56 = arith.addf %54, %55 : vector<8x32xf32>
    %57 = arith.negf %56 : vector<8x32xf32>
    %58 = math.exp %57 : vector<8x32xf32>
    %cst_24 = arith.constant 1.000000e+00 : f32
    %59 = vector.broadcast %cst_24 : f32 to vector<8x32xf32>
    %60 = arith.addf %59, %58 : vector<8x32xf32>
    %61 = arith.divf %59, %60 : vector<8x32xf32>
    %62 = arith.mulf %61, %3 : vector<8x32xf32>
    %cst_25 = arith.constant 1.000000e+00 : f32
    %63 = vector.broadcast %cst_25 : f32 to vector<8x32xf32>
    %64 = arith.subf %63, %61 : vector<8x32xf32>
    %65 = arith.mulf %64, %51 : vector<8x32xf32>
    %66 = arith.addf %62, %65 : vector<8x32xf32>
    %cst_26 = arith.constant 5.000000e-01 : f32
    %67 = vector.broadcast %cst_26 : f32 to vector<8x32xf32>
    %68 = arith.mulf %66, %67 : vector<8x32xf32>
    %c0_i32 = arith.constant 0 : i32
    %69 = arith.cmpi eq, %arg1, %c0_i32 : i32
    %70 = arith.extui %69 : i1 to i32
    %c0_i32_27 = arith.constant 0 : i32
    %71 = arith.cmpi ne, %70, %c0_i32_27 : i32
    scf.if %71 {
      %c0_30 = arith.constant 0 : index
      %c0_31 = arith.constant 0 : index
      %75 = vector.load %arg5[%c0_30, %c0_31] : memref<8x32xf32, #tpu.memory_space<vmem>>, vector<8x32xf32>
      tpu.vector_store %arg5[%c0_30, %c0_31], %68 {strides = array<i32>} : memref<8x32xf32, #tpu.memory_space<vmem>>, vector<8x32xf32>,
    } else {
    }
    %c0_i32_28 = arith.constant 0 : i32
    %72 = arith.cmpi sgt, %arg1, %c0_i32_28 : i32
    %73 = arith.extui %72 : i1 to i32
    %c0_i32_29 = arith.constant 0 : i32
    %74 = arith.cmpi ne, %73, %c0_i32_29 : i32
    scf.if %74 {
      %c0_30 = arith.constant 0 : index
      %c0_31 = arith.constant 0 : index
      %75 = vector.load %arg5[%c0_30, %c0_31] : memref<8x32xf32, #tpu.memory_space<vmem>>, vector<8x32xf32>
      %76 = arith.addf %75, %68 : vector<8x32xf32>
      %c0_32 = arith.constant 0 : index
      %c0_33 = arith.constant 0 : index
      %77 = vector.load %arg5[%c0_32, %c0_33] : memref<8x32xf32, #tpu.memory_space<vmem>>, vector<8x32xf32>
      tpu.vector_store %arg5[%c0_32, %c0_33], %76 {strides = array<i32>} : memref<8x32xf32, #tpu.memory_space<vmem>>, vector<8x32xf32>,
    } else {
    }
    return
  }
  func.func @transform_0(%arg0: i32, %arg1: i32) -> (i32, i32, i32, i32) {
    %c0_i32 = arith.constant 0 : i32
    %c0_i32_0 = arith.constant 0 : i32
    %c0_i32_1 = arith.constant 0 : i32
    return %arg1, %arg0, %c0_i32, %c0_i32_0 : i32, i32, i32, i32
  }
  func.func @transform_1(%arg0: i32, %arg1: i32) -> (i32, i32) {
    %c0_i32 = arith.constant 0 : i32
    %c0_i32_0 = arith.constant 0 : i32
    return %arg0, %c0_i32 : i32, i32
  }
  func.func @transform_2(%arg0: i32, %arg1: i32) -> (i32, i32) {
    %c0_i32 = arith.constant 0 : i32
    %c0_i32_0 = arith.constant 0 : i32
    %c0_i32_1 = arith.constant 0 : i32
    return %c0_i32, %c0_i32_0 : i32, i32
  }
  func.func @transform_3(%arg0: i32, %arg1: i32) -> (i32, i32) {
    %c0_i32 = arith.constant 0 : i32
    %c0_i32_0 = arith.constant 0 : i32
    return %arg0, %c0_i32 : i32, i32
  }
}

</mosaic_0001>

<bundles_post_ra>
// kernel: tpu_custom_call.1
= control target key start
LH: loop header
LB: loop body
LE: loop exit
PB: predicated region body
PF: predicated region fallthrough
CT: control target
= control target key end

     0   :  { %8 = vsyncpa [#allocation3], 0  ;;  %s1197_s12 = smov 0   ;;  %s1199_s13 = smov 0   ;;  %s1492_s0 = inlined_call_operand.vmem [shape: bf16[2,8,16,32], index: 0, kind: input, shape index: {}]   ;;  %s1493_s1 = inlined_call_operand.vmem [shape: f32[8,32], index: 1, kind: input, shape index: {}]   ;;  %s1494_s2 = inlined_call_operand.vmem [shape: f32[192,32], index: 2, kind: input, shape index: {}]   ;;  %s1495_s3 = inlined_call_operand.hbm [shape: f32[8,32], index: 3, kind: output, shape index: {}]  }
   0x1   :  { %s1201_s14 = smov 0  }
   0x2 LB: > { %s880_s15 = sadd.s32 4294967295, %s1169_s14   ;;  %s23_s16 = sadd.s32 1, %s1165_s13  ;;  %s1169_s14 = sphi %s1201_s14, %s14_s14   ;;  %s1165_s13 = sphi %s1199_s13, %s1498_s13   ;;  %s1161_s12 = sphi %s1197_s12, %s1497_s12  }
   0x3   : > { %p24_p0 = scmp.ge.s32.totalorder %s23_s16, 2  ;;  %p884_p1 = scmp.ge.s32.totalorder %s1169_s14, 1 }
   0x4   : > { %p167_p2 = scmp.lt.s32.totalorder %s1169_s14, 3 }
   0x5   : > { %s1500_s16 = smov (%p24_p0, %s23_s16), 0 }
   0x6   : > { %p168_p3 = pnand %p884_p1, %p167_p2 }
   0x7   : > { %p196_p4 = scmp.lt.s32.totalorder (!%p168_p3), %s1161_s12, 1  ;;  %vm283_vm0 = vcmask (!%p168_p3), 261120   ;;  %v244_v56 = vld [vmem:[%s1494_s2 + $0x8] sm:$0xff] (!%p168_p3)  ;;  %v245_v57 = vld [vmem:[%s1494_s2 + $0x10] sm:$0xff] (!%p168_p3)  ;;  %v246_v58 = vld [vmem:[%s1494_s2 + $0x18] sm:$0xff] (!%p168_p3)  ;;  %v1171_v59 = vmov (!%p168_p3), 0.0|0.0  }
   0x8   : > { %171 = sbr.rel (%p168_p3) target bundleno = 1091 (0x443), region = 32  ;;  %1013 = vmatprep.subr.bf16.mxu1 (!%p168_p3), %v1171_v59  ;;  %v1014_v60 = vpack.c.bf16 (!%p168_p3), %v245_v57, %v244_v56  ;;  %v247_v61 = vld [vmem:[%s1494_s2 + $0x20] sm:$0xff] (!%p168_p3)  ;;  %vm1172_vm1 = vmmov (!%p168_p3), 0   ;;  %v1173_v62 = vmov (!%p168_p3), 0.0   ;;  %1025 = vmatprep.subr.bf16.mxu0 (!%p168_p3), %v1171_v59  ;;  %vm497_vm2 = vcmask (!%p168_p3), 1041409   ;;  %s1174_s26 = smov (!%p168_p3), 32  }
   0x9   : > { %972 = vmatprep.mubr.msk.f32.mxu1 (!%p168_p3), %vm1172_vm1, %v1173_v62  ;;  %1010 = vmatprep.mubr.msk.f32.mxu0 (!%p168_p3), %vm1172_vm1, %v1173_v62  ;;  %v1017_v63 = vpack.c.bf16 (!%p168_p3), %v247_v61, %v246_v58  ;;  %vm500_vm3 = vcmask (!%p168_p3), 1042434   ;;  %vm503_vm4 = vcmask (!%p168_p3), 1043459   ;;  %vm506_vm5 = vcmask (!%p168_p3), 1044484   ;;  %s1175_s27 = smov (!%p168_p3), 64   ;;  %p895_p5 = scmp.ne.s32.totalorder (!%p168_p3), %s1161_s12, 0 }
   0xa   : > { %1015 = vmatpush3.bf16.msra.mxu1 (!%p168_p3), %v1014_v60  ;;  %vm509_vm6 = vcmask (!%p168_p3), 1045509   ;;  %vm512_vm7 = vcmask (!%p168_p3), 1046534   ;;  %vm515_vm8 = vcmask (!%p168_p3), 1047559   ;;  %vm694_vm10 = vcmask (!%p168_p3), 523264  }
   0xb   : > { %1016 = vmatprep.subr.bf16.mxu1 (!%p168_p3), %v1171_v59  ;;  %vm700_vm11 = vcmask (!%p168_p3), 785408  }
   0xe   : > { %1018 = vmatpush3.bf16.msra.mxu1 (!%p168_p3), %v1017_v63 }
   0xf   : > { %s197_s17 = scalar_select %p196_p4, %s1161_s12, 1  ;;  %1019 = vmatprep.subr.bf16.mxu1 %v1171_v59 }
  0x11   : > { %s901_s18 = sshll.u32 %s197_s17, 6 }
  0x12   : > { %s1223_s21 = scalar_lea.vmem %s1492_s0, %s901_s18 }
  0x13   : > { %v935_v0 = vld [vmem:[%s1223_s21 + $0x10] sm:$0xff]   ;;  %v934_v1 = vld [vmem:[%s1223_s21 + $0x8] sm:$0xff]   ;;  %v903_v2 = vld [vmem:[%s1223_s21] sm:$0xff]  }
  0x14   : > { %v1228_v3 = vunpack.c.l.bf16 %v935_v0  ;;  %v1230_v4 = vunpack.c.l.bf16 %v934_v1  ;;  %v1232_v5 = vunpack.c.h.bf16 %v935_v0  ;;  %v1234_v6 = vunpack.c.h.bf16 %v934_v1  ;;  %v936_v13 = vld [vmem:[%s1223_s21 + $0x18] sm:$0xff]   ;;  %v937_v22 = vld [vmem:[%s1223_s21 + $0x20] sm:$0xff]   ;;  %v938_v29 = vld [vmem:[%s1223_s21 + $0x28] sm:$0xff]  }
  0x15   : > { %v1236_v7 = vunpack.c.h.bf16 %v903_v2  ;;  %v1238_v8 = vunpack.c.l.bf16 %v903_v2  ;;  %v1251_v16 = vunpack.c.h.bf16 %v936_v13  ;;  %v1253_v17 = vunpack.c.l.bf16 %v936_v13  ;;  %v939_v36 = vld [vmem:[%s1223_s21 + $0x30] sm:$0xff]   ;;  %v940_v43 = vld [vmem:[%s1223_s21 + $0x38] sm:$0xff]  }
  0x16   : > { %v271_v9 = vmul.f32 %v1228_v3, %v1228_v3  ;;  %v269_v10 = vmul.f32 %v1230_v4, %v1230_v4  ;;  %v272_v11 = vmul.f32 %v1232_v5, %v1232_v5  ;;  %v270_v12 = vmul.f32 %v1234_v6, %v1234_v6 }
  0x17   : > { %v268_v20 = vmul.f32 %v1236_v7, %v1236_v7  ;;  %v267_v21 = vmul.f32 %v1238_v8, %v1238_v8  ;;  %v274_v23 = vmul.f32 %v1251_v16, %v1251_v16  ;;  %v273_v24 = vmul.f32 %v1253_v17, %v1253_v17 }
  0x18   : > { %v296_v14 = vsel %vm283_vm0, %v271_v9, 0.0  ;;  %v290_v15 = vsel %vm283_vm0, %v269_v10, 0.0  ;;  %v299_v18 = vsel %vm283_vm0, %v272_v11, 0.0  ;;  %v293_v19 = vsel %vm283_vm0, %v270_v12, 0.0 }
  0x19   : > { %297 = vadd.xlane.f32.xlu1 %v296_v14  ;;  %291 = vadd.xlane.f32.xlu0 %v290_v15  ;;  %v287_v25 = vsel %vm283_vm0, %v268_v20, 0.0  ;;  %v284_v26 = vsel %vm283_vm0, %v267_v21, 0.0  ;;  %v1268_v27 = vunpack.c.h.bf16 %v937_v22  ;;  %v1270_v28 = vunpack.c.l.bf16 %v937_v22 }
  0x1a   : > { %v305_v30 = vsel %vm283_vm0, %v274_v23, 0.0  ;;  %v302_v31 = vsel %vm283_vm0, %v273_v24, 0.0  ;;  %v1279_v34 = vunpack.c.h.bf16 %v938_v29  ;;  %v1281_v35 = vunpack.c.l.bf16 %v938_v29 }
  0x1b   : > { %v276_v32 = vmul.f32 %v1268_v27, %v1268_v27  ;;  %v275_v33 = vmul.f32 %v1270_v28, %v1270_v28  ;;  %v1284_v37 = vunpack.c.h.bf16 %v939_v36  ;;  %v1286_v38 = vunpack.c.l.bf16 %v939_v36 }
  0x1c   : > { %v278_v41 = vmul.f32 %v1279_v34, %v1279_v34  ;;  %v277_v42 = vmul.f32 %v1281_v35, %v1281_v35  ;;  %v1295_v44 = vunpack.c.h.bf16 %v940_v43  ;;  %v1297_v45 = vunpack.c.l.bf16 %v940_v43 }
  0x1d   : > { %300 = vadd.xlane.f32.xlu1 %v299_v18  ;;  %294 = vadd.xlane.f32.xlu0 %v293_v19  ;;  %v311_v39 = vsel %vm283_vm0, %v276_v32, 0.0  ;;  %v308_v40 = vsel %vm283_vm0, %v275_v33, 0.0  ;;  %v280_v48 = vmul.f32 %v1284_v37, %v1284_v37  ;;  %v279_v49 = vmul.f32 %v1286_v38, %v1286_v38 }
  0x1e   : > { %v317_v46 = vsel %vm283_vm0, %v278_v41, 0.0  ;;  %v314_v47 = vsel %vm283_vm0, %v277_v42, 0.0  ;;  %v282_v52 = vmul.f32 %v1295_v44, %v1295_v44  ;;  %v281_v53 = vmul.f32 %v1297_v45, %v1297_v45 }
  0x1f   : > { %v323_v50 = vsel %vm283_vm0, %v280_v48, 0.0  ;;  %v320_v51 = vsel %vm283_vm0, %v279_v49, 0.0 }
  0x20   : > { %v329_v54 = vsel %vm283_vm0, %v282_v52, 0.0  ;;  %v326_v55 = vsel %vm283_vm0, %v281_v53, 0.0 }
  0x21   : > { %288 = vadd.xlane.f32.xlu1 %v287_v25  ;;  %285 = vadd.xlane.f32.xlu0 %v284_v26 }
  0x25   : > { %306 = vadd.xlane.f32.xlu1 %v305_v30  ;;  %303 = vadd.xlane.f32.xlu0 %v302_v31 }
  0x29   : > { %312 = vadd.xlane.f32.xlu1 %v311_v39  ;;  %309 = vadd.xlane.f32.xlu0 %v308_v40 }
  0x2d   : > { %318 = vadd.xlane.f32.xlu1 %v317_v46  ;;  %315 = vadd.xlane.f32.xlu0 %v314_v47 }
  0x31   : > { %324 = vadd.xlane.f32.xlu1 %v323_v50  ;;  %321 = vadd.xlane.f32.xlu0 %v320_v51 }
  0x35   : > { %330 = vadd.xlane.f32.xlu1 %v329_v54  ;;  %327 = vadd.xlane.f32.xlu0 %v326_v55 }
  0xa6   : > { %v298_v0 = vpop.xlane.xlu1 %297  ;;  %v292_v1 = vpop.xlane.xlu0 %291 }
  0xa7   : > { %v336_v2 = vmax.f32 %v298_v0, 1e-24  ;;  %v334_v9 = vmax.f32 %v292_v1, 1e-24 }
  0xa9   : > { %1079 = vrsqrt.f32 %v336_v2 }
  0xaa   : > { %1081 = vrsqrt.f32 %v334_v9  ;;  %v301_v10 = vpop.xlane.xlu1 %300  ;;  %v295_v11 = vpop.xlane.xlu0 %294 }
  0xab   : > { %v337_v12 = vmax.f32 %v301_v10, 1e-24  ;;  %v335_v13 = vmax.f32 %v295_v11, 1e-24 }
  0xad   : > { %1083 = vrsqrt.f32 %v337_v12 }
  0xae   : > { %1085 = vrsqrt.f32 %v335_v13  ;;  %v289_v14 = vpop.xlane.xlu1 %288  ;;  %v286_v15 = vpop.xlane.xlu0 %285 }
  0xaf   : > { %v333_v18 = vmax.f32 %v289_v14, 1e-24  ;;  %v332_v19 = vmax.f32 %v286_v15, 1e-24 }
  0xb1   : > { %1087 = vrsqrt.f32 %v333_v18 }
  0xb2   : > { %1089 = vrsqrt.f32 %v332_v19  ;;  %v307_v20 = vpop.xlane.xlu1 %306  ;;  %v304_v21 = vpop.xlane.xlu0 %303 }
  0xb3   : > { %v1080_v22 = vpop.eup %1079  ;;  %v339_v23 = vmax.f32 %v307_v20, 1e-24  ;;  %v338_v24 = vmax.f32 %v304_v21, 1e-24 }
  0xb4   : > { %v1082_v25 = vpop.eup %1081  ;;  %v368_v26 = vmul.f32 %v1080_v22, %v1228_v3 }
  0xb5   : > { %1091 = vrsqrt.f32 %v339_v23  ;;  %v366_v32 = vmul.f32 %v1082_v25, %v1230_v4  ;;  %v460_v25 = vlaneseq }
  0xb6   : > { %1093 = vrsqrt.f32 %v338_v24  ;;  %v313_v29 = vpop.xlane.xlu1 %312  ;;  %v310_v30 = vpop.xlane.xlu0 %309  ;;  %v398_v42 = vsel %vm283_vm0, %v368_v26, 0.0 }
  0xb7   : > { %v1084_v31 = vpop.eup %1083  ;;  %v341_v33 = vmax.f32 %v313_v29, 1e-24  ;;  %v340_v36 = vmax.f32 %v310_v30, 1e-24  ;;  %v389_v48 = vsel %vm283_vm0, %v366_v32, 0.0 }
  0xb8   : > { %v1086_v39 = vpop.eup %1085  ;;  %v369_v40 = vmul.f32 %v1084_v31, %v1232_v5 }
  0xb9   : > { %v367_v41 = vmul.f32 %v1086_v39, %v1234_v6  ;;  %1095 = vrsqrt.f32 %v341_v33 }
  0xba   : > { %v399_v43 = vsel %vm283_vm0, %v369_v40, 0.0  ;;  %1097 = vrsqrt.f32 %v340_v36  ;;  %v319_v3 = vpop.xlane.xlu1 %318  ;;  %v316_v46 = vpop.xlane.xlu0 %315 }
  0xbb   : > { %v1088_v47 = vpop.eup %1087  ;;  %v390_v4 = vsel %vm283_vm0, %v367_v41, 0.0  ;;  %v343_v49 = vmax.f32 %v319_v3, 1e-24  ;;  %v342_v50 = vmax.f32 %v316_v46, 1e-24  ;;  %v400_v52 = vadd.f32 %v399_v43, %v398_v42 }
  0xbc   : > { %v1090_v51 = vpop.eup %1089  ;;  %v391_v5 = vadd.f32 %v390_v4, %v389_v48  ;;  %v365_v6 = vmul.f32 %v1088_v47, %v1236_v7 }
  0xbd   : > { %v364_v53 = vmul.f32 %v1090_v51, %v1238_v8  ;;  %1099 = vrsqrt.f32 %v343_v49  ;;  %v401_v1 = vrot.slane %v400_v52, 4 }
  0xbe   : > { %v392_v54 = vrot.slane %v391_v5, 4  ;;  %v381_v55 = vsel %vm283_vm0, %v365_v6, 0.0  ;;  %1101 = vrsqrt.f32 %v342_v50  ;;  %v325_v56 = vpop.xlane.xlu1 %324  ;;  %v322_v57 = vpop.xlane.xlu0 %321 }
  0xbf   : > { %v1092_v58 = vpop.eup %1091  ;;  %v380_v60 = vsel %vm283_vm0, %v364_v53, 0.0  ;;  %v345_v61 = vmax.f32 %v325_v56, 1e-24  ;;  %v344_v63 = vmax.f32 %v322_v57, 1e-24  ;;  %v402_v21 = vadd.f32 %v401_v1, %v400_v52 }
  0xc0   : > { %v1094_v0 = vpop.eup %1093  ;;  %v382_v2 = vadd.f32 %v381_v55, %v380_v60  ;;  %v371_v9 = vmul.f32 %v1092_v58, %v1251_v16  ;;  %v393_v7 = vadd.f32 %v392_v54, %v391_v5 }
  0xc1   : > { %v370_v8 = vmul.f32 %v1094_v0, %v1253_v17  ;;  %1103 = vrsqrt.f32 %v345_v61  ;;  %v403_v36 = vrot.slane %v402_v21, 2  ;;  %v1367_v0 = vld [vmem:[%s1494_s2] sm:$0xf] }
  0xc2   : > { %v383_v10 = vrot.slane %v382_v2, 4  ;;  %v408_v11 = vsel %vm283_vm0, %v371_v9, 0.0  ;;  %1105 = vrsqrt.f32 %v344_v63  ;;  %v331_v12 = vpop.xlane.xlu1 %330  ;;  %v328_v13 = vpop.xlane.xlu0 %327  ;;  %v394_v24 = vrot.slane %v393_v7, 2 }
  0xc3   : > { %v1096_v14 = vpop.eup %1095  ;;  %v407_v15 = vsel %vm283_vm0, %v370_v8, 0.0  ;;  %v347_v18 = vmax.f32 %v331_v12, 1e-24  ;;  %v346_v19 = vmax.f32 %v328_v13, 1e-24  ;;  %v404_v50 = vadd.f32 %v403_v36, %v402_v21 }
  0xc4   : > { %v1098_v20 = vpop.eup %1097  ;;  %v384_v22 = vadd.f32 %v383_v10, %v382_v2  ;;  %v409_v23 = vadd.f32 %v408_v11, %v407_v15  ;;  %v373_v16 = vmul.f32 %v1096_v14, %v1268_v27  ;;  %v395_v41 = vadd.f32 %v394_v24, %v393_v7 }
  0xc5   : > { %v372_v17 = vmul.f32 %v1098_v20, %v1270_v28  ;;  %1107 = vrsqrt.f32 %v347_v18  ;;  %v1355_v28 = vshrl.u32 %v460_v25, 7  ;;  %v405_v63 = vrot.slane %v404_v50, 1 }
  0xc6   : > { %v385_v26 = vrot.slane %v384_v22, 2  ;;  %v410_v29 = vrot.slane %v409_v23, 4  ;;  %v417_v30 = vsel %vm283_vm0, %v373_v16, 0.0  ;;  %1109 = vrsqrt.f32 %v346_v19 }
  0xc7   : > { %v1100_v31 = vpop.eup %1099  ;;  %v416_v32 = vsel %vm283_vm0, %v372_v17, 0.0  ;;  %v396_v5 = vrot.slane %v395_v41, 1  ;;  %v462_v53 = vsub.s32 0, %v1355_v28  ;;  %v406_v19 = vadd.f32 %v405_v63, %v404_v50 }
  0xc8   : > { %v1102_v33 = vpop.eup %1101  ;;  %v411_v39 = vadd.f32 %v410_v29, %v409_v23  ;;  %v418_v40 = vadd.f32 %v417_v30, %v416_v32  ;;  %v375_v27 = vmul.f32 %v1100_v31, %v1279_v34  ;;  %v386_v43 = vadd.f32 %v385_v26, %v384_v22 }
  0xc9   : > { %v374_v42 = vmul.f32 %v1102_v33, %v1281_v35  ;;  %v397_v9 = vadd.f32 %v396_v5, %v395_v41  ;;  %v463_v13 = vrot.slane %v1367_v0, %v462_v53  ;;  %v474_v24 = vsub.s32 1, %v1355_v28 }
  0xca   : > { %v412_v3 = vrot.slane %v411_v39, 2  ;;  %v419_v46 = vrot.slane %v418_v40, 4  ;;  %v426_v48 = vsel %vm283_vm0, %v375_v27, 0.0  ;;  %v387_v54 = vrot.slane %v386_v43, 1 }
  0xcb   : > { %v1104_v47 = vpop.eup %1103  ;;  %v425_v4 = vsel %vm283_vm0, %v374_v42, 0.0  ;;  %v454_v30 = vmul.f32 0.999995, %v406_v19 }
  0xcc   : > { %v1106_v49 = vpop.eup %1105  ;;  %v413_v51 = vadd.f32 %v412_v3, %v411_v39  ;;  %v420_v52 = vadd.f32 %v419_v46, %v418_v40  ;;  %v427_v6 = vadd.f32 %v426_v48, %v425_v4  ;;  %v377_v34 = vmul.f32 %v1104_v47, %v1284_v37 }
  0xcd   : > { %v376_v35 = vmul.f32 %v1106_v49, %v1286_v38  ;;  %v388_v14 = vadd.f32 %v387_v54, %v386_v43  ;;  %v475_v40 = vrot.slane %v1367_v0, %v474_v24  ;;  %v466_v47 = vmul.f32 %v463_v13, %v454_v30 }
  0xce   : > { %v421_v55 = vrot.slane %v420_v52, 2  ;;  %v414_v57 = vrot.slane %v413_v51, 1  ;;  %v428_v58 = vrot.slane %v427_v6, 4  ;;  %v435_v60 = vsel %vm283_vm0, %v377_v34, 0.0 }
  0xcf   : > { %v1108_v56 = vpop.eup %1107  ;;  %v434_v61 = vsel %vm283_vm0, %v376_v35, 0.0  ;;  %v452_v25 = vmul.f32 0.999995, %v388_v14  ;;  %v478_v35 = vadd.f32 %v475_v40, %v466_v47 }
  0xd0   : > { %v422_v37 = vadd.f32 %v421_v55, %v420_v52  ;;  %v436_v1 = vadd.f32 %v435_v60, %v434_v61  ;;  %v379_v38 = vmul.f32 %v1108_v56, %v1295_v44  ;;  %v1110_v2 = vpop.eup %1109  ;;  %v429_v7 = vadd.f32 %v428_v58, %v427_v6 }
  0xd1   : > { %v378_v12 = vmul.f32 %v1110_v2, %v1297_v45  ;;  %v415_v15 = vadd.f32 %v414_v57, %v413_v51  ;;  %v453_v44 = vmul.f32 0.999995, %v397_v9  ;;  %v464_v43 = vmul.f32 %v463_v13, %v452_v25 }
  0xd2   : > { %v423_v8 = vrot.slane %v422_v37, 1  ;;  %v437_v10 = vrot.slane %v436_v1, 4  ;;  %v444_v11 = vsel %vm283_vm0, %v379_v38, 0.0  ;;  %v430_v18 = vrot.slane %v429_v7, 2 }
  0xd3   : > { %v443_v21 = vsel %vm283_vm0, %v378_v12, 0.0  ;;  %v455_v45 = vmul.f32 0.999995, %v415_v15  ;;  %v465_v33 = vmul.f32 %v463_v13, %v453_v44  ;;  %v476_v5 = vadd.f32 %v475_v40, %v464_v43 }
  0xd4   : > { %v438_v20 = vadd.f32 %v437_v10, %v436_v1  ;;  %v424_v22 = vadd.f32 %v423_v8, %v422_v37  ;;  %v431_v23 = vadd.f32 %v430_v18, %v429_v7  ;;  %v445_v16 = vadd.f32 %v444_v11, %v443_v21  ;;  %v250_v18 = vld [vmem:[%s1494_s2 + $0x38] sm:$0xff] }
  0xd5   : > { %v467_v3 = vmul.f32 %v463_v13, %v455_v45  ;;  %v477_v50 = vadd.f32 %v475_v40, %v465_v33  ;;  %v499_v63 = vrot.slane %v478_v35, 6  ;;  %v604_v45 = vsub.s32 3, %v1355_v28  ;;  %v890_v35 = vld [vmem:[%s1494_s2 + $0x50] ss:$0 sm:$0xff] }
  0xd6   : > { %v439_v17 = vrot.slane %v438_v20, 2  ;;  %v446_v26 = vrot.slane %v445_v16, 4  ;;  %v432_v29 = vrot.slane %v431_v23, 1  ;;  %v456_v32 = vmul.f32 0.999995, %v424_v22 }
  0xd7   : > { %v479_v6 = vadd.f32 %v475_v40, %v467_v3  ;;  %v496_v56 = vrot.slane %v477_v50, 7  ;;  %v887_v22 = vld [vmem:[%s1494_s2 + $0x28] ss:$0 sm:$0xff]  ;;  %v258_v3 = vld [vmem:[%s1494_s2 + $0x78] sm:$0xff] }
  0xd8   : > { %v440_v31 = vadd.f32 %v439_v17, %v438_v20  ;;  %v433_v36 = vadd.f32 %v432_v29, %v431_v23  ;;  %v447_v39 = vadd.f32 %v446_v26, %v445_v16  ;;  %v468_v48 = vmul.f32 %v463_v13, %v456_v32  ;;  %v251_v20 = vld [vmem:[%s1494_s2 + $0x40] sm:$0xff]  ;;  %v262_v50 = vld [vmem:[%s1494_s2 + $0x98] sm:$0xff] }
  0xd9   : > { %v498_v60 = vsel %vm497_vm2, %v496_v56, %v476_v5  ;;  %v502_v61 = vrot.slane %v479_v6, 5  ;;  %v599_v26 = vsub.s32 2, %v1355_v28  ;;  %v256_v28 = vld [vmem:[%s1494_s2 + $0x68] sm:$0xff]  ;;  %v265_v6 = vld [vmem:[%s1494_s2 + $0xb0] sm:$0xff] }
  0xda   : > { %v441_v41 = vrot.slane %v440_v31, 1  ;;  %v448_v27 = vrot.slane %v447_v39, 2  ;;  %v457_v42 = vmul.f32 0.999995, %v433_v36  ;;  %v480_v53 = vadd.f32 %v475_v40, %v468_v48  ;;  %v260_v48 = vld [vmem:[%s1494_s2 + $0x88] sm:$0xff] }
  0xdb   : > { %v501_v2 = vsel %vm500_vm3, %v499_v63, %v498_v60  ;;  %v600_v32 = vrot.slane %v1367_v0, %v599_v26  ;;  %v605_v36 = vrot.slane %v1367_v0, %v604_v45  ;;  %v257_v0 = vld [vmem:[%s1494_s2 + $0x70] sm:$0xff]  ;;  %v264_v5 = vld [vmem:[%s1494_s2 + $0xa8] sm:$0xff]  ;;  %v892_v63 = vld [vmem:[%s1494_s2 + $0xb8] ss:$0 sm:$0xff] }
  0xdc   : > { %v442_v46 = vadd.f32 %v441_v41, %v440_v31  ;;  %v449_v4 = vadd.f32 %v448_v27, %v447_v39  ;;  %v469_v49 = vmul.f32 %v463_v13, %v457_v42  ;;  %v505_v37 = vrot.slane %v480_v53, 4  ;;  %v254_v41 = vld [vmem:[%s1494_s2 + $0x58] sm:$0xff]  ;;  %v255_v27 = vld [vmem:[%s1494_s2 + $0x60] sm:$0xff] }
  0xdd   : > { %v504_v8 = vsel %vm503_vm4, %v502_v61, %v501_v2  ;;  %v1026_v42 = vpack.c.bf16 %v255_v27, %v254_v41  ;;  %v1029_v43 = vpack.c.bf16 %v257_v0, %v256_v28 }
  0xde   : > { %v458_v51 = vmul.f32 0.999995, %v442_v46  ;;  %v450_v52 = vrot.slane %v449_v4, 1  ;;  %v481_v55 = vadd.f32 %v475_v40, %v469_v49  ;;  %v507_v10 = vsel %vm506_vm5, %v505_v37, %v504_v8  ;;  %v259_v46 = vld [vmem:[%s1494_s2 + $0x80] sm:$0xff] }
  0xdf   : > { %1027 = vmatpush3.bf16.msra.mxu0 %v1026_v42  ;;  %v1032_v47 = vpack.c.bf16 %v259_v46, %v258_v3 }
  0xe0   : > { %v470_v34 = vmul.f32 %v463_v13, %v458_v51  ;;  %v451_v54 = vadd.f32 %v450_v52, %v449_v4  ;;  %v508_v38 = vrot.slane %v481_v55, 3  ;;  %1028 = vmatprep.subr.bf16.mxu0 %v1171_v59  ;;  %v261_v4 = vld [vmem:[%s1494_s2 + $0x90] sm:$0xff]  ;;  %v263_v51 = vld [vmem:[%s1494_s2 + $0xa0] sm:$0xff] }
  0xe1   : > { %v1035_v49 = vpack.c.bf16 %v261_v4, %v260_v48  ;;  %v1038_v52 = vpack.c.bf16 %v263_v51, %v262_v50 }
  0xe2   : > { %v482_v57 = vadd.f32 %v475_v40, %v470_v34  ;;  %v459_v58 = vmul.f32 0.999995, %v451_v54  ;;  %v510_v11 = vsel %vm509_vm6, %v508_v38, %v507_v10  ;;  %v1041_v34 = vpack.c.bf16 %v265_v6, %v264_v5  ;;  %v242_v54 = vld [vmem:[%s1493_s1] sm:$0xff] }
  0xe3   : > { %1030 = vmatpush3.bf16.msra.mxu0 %v1029_v43 }
  0xe4   : > { %v471_v1 = vmul.f32 %v463_v13, %v459_v58  ;;  %v511_v9 = vrot.slane %v482_v57, 2  ;;  %v249_v13 = vld [vmem:[%s1494_s2 + $0x30] sm:$0xff]  ;;  %1031 = vmatprep.subr.bf16.mxu0 %v1171_v59 }
  0xe5   : > { %v1020_v19 = vpack.c.bf16 %v250_v18, %v249_v13 }
  0xe6   : > { %v483_v7 = vadd.f32 %v475_v40, %v471_v1  ;;  %v513_v14 = vsel %vm512_vm7, %v511_v9, %v510_v11 }
  0xe7   : > { %1033 = vmatpush3.bf16.msra.mxu0 %v1032_v47 }
  0xe8   : > { %v514_v12 = vrot.slane %v483_v7, 1  ;;  %1034 = vmatprep.subr.bf16.mxu0 %v1171_v59 }
  0xea   : > { %v516_v15 = vsel %vm515_vm8, %v514_v12, %v513_v14 }
  0xeb   : > { %973 = vmatmul.mubr.msk.f32.vlgmr.msra.gmra.mrb[0].mxu1 %vm283_vm0, %v516_v15  ;;  %1036 = vmatpush3.bf16.msra.mxu0 %v1035_v49 }
  0xec   : > { %983 = vmatprep.mubr.msk.f32.mxu1 %vm1172_vm1, %v1173_v62  ;;  %1021 = vmatpush3.bf16.msra.mxu1 %v1020_v19  ;;  %v252_v62 = vld [vmem:[%s1494_s2 + $0x48] sm:$0xff] }
  0xed   : > { %1022 = vmatprep.subr.bf16.mxu1 %v1171_v59  ;;  %v1023_v21 = vpack.c.bf16 %v252_v62, %v251_v20  ;;  %1037 = vmatprep.subr.bf16.mxu0 %v1171_v59 }
  0xef   : > { %1039 = vmatpush3.bf16.msra.mxu0 %v1038_v52 }
  0xf0   : > { %1024 = vmatpush3.bf16.msra.mxu1 %v1023_v21  ;;  %1040 = vmatprep.subr.bf16.mxu0 %v1171_v59 }
  0xf3   : > { %1042 = vmatpush3.bf16.msra.mxu0 %v1041_v34 }
 0x1be   : > { %v585_v44 = vpop.f32.mrb[0].mxu1 }
 0x1bf   : > { %v586_v23 = vadd.f32 %v887_v22, %v585_v44  ;;  %v974_v16 = vpop.f32.mrb[1].mxu1 }
 0x1c1   : > { %v590_v24 = vmul.f32 1.442695, %v586_v23  ;;  %vm589_vm9 = vcmp.gt.f32.partialorder %v586_v23, 0.0 }
 0x1c3   : > { %1111 = vpow2.f32 %v590_v24 }
 0x1cd   : > { %v1112_v17 = vpop.eup %1111 }
 0x1ce   : > { %v889_v25 = vadd.f32 -1.0, %v1112_v17 }
 0x1d0   : > { %v593_v29 = vmul.f32 1.6732632, %v889_v25 }
 0x1d2   : > { %v594_v30 = vsel %vm589_vm9, %v586_v23, %v593_v29 }
 0x1d3   : > { %v595_v31 = vmul.f32 1.050701, %v594_v30 }
 0x1d5   : > { %v596_v33 = vmul.f32 0.999995, %v595_v31 }
 0x1d7   : > { %v601_v39 = vmul.f32 %v600_v32, %v596_v33 }
 0x1d9   : > { %v606_v40 = vadd.f32 %v605_v36, %v601_v39 }
 0x1db   : > { %984 = vmatmul.mubr.msk.f32.vlgmr.msra.gmra.mrb[2].mxu1 %vm283_vm0, %v606_v40 }
 0x2ae   : > { %v680_v53 = vpop.f32.mrb[2].mxu1 }
 0x2af   : > { %v681_v59 = vadd.f32 %v890_v35, %v680_v53  ;;  %v985_v55 = vpop.f32.mrb[3].mxu1 }
 0x2b1   : > { %686 = vrot.lane.b32.xlu0 %v681_v59, %s1174_s26  ;;  %v684_v56 = vmul.f32 %v681_v59, %v242_v54 }
 0x2b3   : > { %690 = vrot.lane.b32.xlu1 %v684_v56, %s1175_s27 }
 0x323   : > { %v687_v57 = vpop.permute.xlu0 %686 }
 0x324   : > { %v693_v58 = vsel %vm283_vm0, %v242_v54, %v687_v57 }
 0x325   : > { %v691_v60 = vpop.permute.xlu1 %690 }
 0x326   : > { %v695_v61 = vsel %vm694_vm10, %v693_v58, %v691_v60 }
 0x327   : > { %1011 = vmatmul.mubr.msk.f32.vlgmr.msra.gmra.mrb[0].mxu0 %vm700_vm11, %v695_v61 }
 0x3fa   : > { %v770_v37 = vpop.f32.mrb[0].mxu0 }
 0x3fb   : > { %v771_v1 = vadd.f32 %v892_v63, %v770_v37  ;;  %v1012_v38 = vpop.f32.mrb[1].mxu0 }
 0x3fd   : > { %v894_v2 = vmul.f32 -1.442695, %v771_v1 }
 0x3ff   : > { %1113 = vpow2.f32 %v894_v2 }
 0x409   : > { %v1114_v9 = vpop.eup %1113 }
 0x40a   : > { %v777_v7 = vadd.f32 1.0, %v1114_v9 }
 0x40c   : > { %1115 = vrcp.f32 %v777_v7 }
 0x416   : > { %v1116_v8 = vpop.eup %1115 }
 0x417   : > { %v781_v10 = vsub.f32 1.0, %v1116_v8  ;;  %v780_v11 = vmul.f32 %v1116_v8, %v242_v54  ;;  %788 = sbr.rel (%p895_p5) target bundleno = 1056 (0x420), region = 36 }
 0x419   : > { %v782_v12 = vmul.f32 %v781_v10, %v681_v59 }
 0x41b   : > { %v783_v14 = vadd.f32 %v782_v12, %v780_v11 }
 0x41d   : > { %v784_v15 = vmul.f32 0.5, %v783_v14 }
 0x41f   : > { %789 = vst.msk [vmem:[#allocation2] sm:$0xff] %vm283_vm0, %v784_v15 }
 0x420 PF: > { %p896_p6 = scmp.le.s32.totalorder %s1161_s12, 0 }
 0x422   : > { %793 = sbr.rel (%p896_p6) target bundleno = 1066 (0x42a), region = 40 }
 0x426   : > { %v794_v13 = vld [vmem:[#allocation2] sm:$0xff] (!%p896_p6) }
 0x427   : > { %v795_v18 = vadd.f32 (!%p896_p6), %v794_v13, %v784_v15 }
 0x429   : > { %796 = vst.msk [vmem:[#allocation2] sm:$0xff] %vm283_vm0, %v795_v18 }
 0x42a PF: > { %p1457_p7 = scmp.eq.s32.totalorder %s880_s15, 1  ;;  %s1176_s4 = smov [#allocation2]  }
 0x42b   : > { %s806_s5 = sshll.u32 %s1176_s4, 4  ;;  %s807_s5 = int_to_ptr.vmem [resolvable:$true] %s806_s5 }
 0x42c   : > { %s1117_s6 = scalar_lea.vmem %s807_s5, 128  ;;  %p1124_p11 = scmp.lt.s32.totalorder %s807_s5, %s807_s5 }
 0x42d   : > { %p1118_p8 = scmp.ne.s32.totalorder %s807_s5, %s1117_s6  ;;  %p1125_p12 = scmp.lt.s32.totalorder %s1117_s6, %s1117_s6 }
 0x42f   : > { %p1119_p9 = pnand %p1118_p8, %p1457_p7  ;;  %p1126_p13 = por %p1125_p12, %p1124_p11 }
 0x431   : > { %p1120_p10 = pneg %p1119_p9 }
 0x433   : > { %p1127_p0 = pnand %p1126_p13, %p1120_p10 }
 0x435   : > { %1130 = shalt.err (!%p1127_p0)
}
 0x436   : > { %s1131_s15 = scalar_lea.hbm %s1495_s3, 128 }
 0x437   : > { %p1132_p1 = scmp.ne.s32.totalorder %s1495_s3, %s1131_s15  ;;  %p1137_p4 = scmp.lt.u32.totalorder %s1131_s15, %s1495_s3 }
 0x439   : > { %p1133_p2 = pnand %p1132_p1, %p1457_p7 }
 0x43b   : > { %p1134_p3 = pneg %p1133_p2 }
 0x43d   : > { %p1139_p5 = pnand %p1137_p4, %p1134_p3 }
 0x43f   : > { %1142 = shalt.err (!%p1139_p5)
}
 0x440   : > { %1044 = dma.vmem_to_hbm [thread:$0]  (%p1457_p7), %s807_s5, 128, %s1495_s3, [#allocation3]  }
 0x441   : > { %1156 = dma.done.wait (%p1457_p7), [#allocation3], 128  }
 0x442   : > { %1158 = vsyncadd (%p1457_p7), [#allocation3], 4294967168 }
 0x443 PF: > { %s14_s14 = sadd.s32 1, %s1169_s14   ;;  %s1497_s12 = smov %s1165_s13 }
 0x444   : > { %p11_p6 = scmp.ge.s32.totalorder %s14_s14, 4   ;;  %s1498_s13 = smov %s1500_s16 }
 0x446   :  { %13 = sbr.rel (!%p11_p6) target bundleno = 2 (0x2), region = 71 }
 0x44d   :  { %819 = vsyncpa [#allocation3], 1 }
 0x44e   :  { %821 = vsyncpa [#allocation3 + $0x1], 1 }

</bundles_post_ra>
